<compile_context>
chip_gen: v6e
topology: v6e:2x2x1
jax: 0.10.0
libtpu: 0.0.40
codegen_flags: <defaults>
</compile_context>

<pallas_src>
import jax
import jax.numpy as jnp
from jax.experimental import pallas as pl
from jax.experimental.pallas import tpu as pltpu


def _make_conv_relu_kernel(KH, KW, W, Cpad, Lb):
    """Kernel over one block:
       x (Cpad, Lb), w (Cout, KH*KW*Cpad), b (Cout, 1), scratch xs (K, Lb)."""

    def kernel(x_ref, w_ref, b_ref, o_ref, xs_ref):
        x = x_ref[...]                                   # (Cpad, Lb) f32

        # Stage the im2col operand into VMEM scratch: stripe t holds x rotated
        # left by (kh*W + kw) lanes, rows ordered (kh, kw, c) to match the
        # weight slab. Rotations go to the XLU (free slot vs. MXU/VALU); each
        # stripe store is an aligned 8-sublane unmasked vst. Wrap-around lanes
        # only ever land on invalid output columns (sliced off in the wrapper).
        t = 0
        for kh in range(KH):
            for kw in range(KW):
                off = kh * W + kw
                if off == 0:
                    tap = x
                else:
                    # left-rotate by `off` == right-rotate by Lb - off
                    tap = pltpu.roll(x, Lb - off, 1)
                xs_ref[pl.ds(t * Cpad, Cpad), :] = tap
                t += 1

        # Single MXU push: (Cout, K) x (K, Lb), f32 accumulation.
        acc = jnp.dot(w_ref[...], xs_ref[...],
                      preferred_element_type=jnp.float32)  # (Cout, Lb)
        acc = acc + b_ref[...]                           # (Cout, 1) -> lanes
        o_ref[...] = jnp.maximum(acc, 0.0).astype(o_ref.dtype)

    return kernel


def conv2d_relu_pallas(x_nchw, weight_oihw, bias):
    """Conv2d(stride=1, pad=0) + ReLU, matching torch.nn.functional semantics.

    x_nchw:      (N, Cin, H, W)       float32
    weight_oihw: (Cout, Cin, KH, KW)  float32
    bias:        (Cout,)              float32
    returns:     (N, Cout, OH, OW)    float32
    """
    N, Cin, H, W = x_nchw.shape
    Cout, Cin_w, KH, KW = weight_oihw.shape
    assert Cin == Cin_w
    OH, OW = H - KH + 1, W - KW + 1
    HW = H * W
    Cpad = ((Cin + 7) // 8) * 8                          # pad channels to sublane tile
    K = KH * KW * Cpad

    # Single block covering all batch*spatial lanes (single-TC friendly).
    Lb = N * HW

    # Preconditions of the lane-rotation im2col trick (stride=1, padding=0,
    # blocks aligned to whole images, lane/sublane-tile-friendly shapes).
    assert KH <= H and KW <= W, "kernel larger than input (padding=0 assumed)"
    assert Lb % HW == 0, "block boundary must coincide with image boundary"
    assert Lb % 128 == 0, "batch*H*W must fill whole lane tiles"
    assert Cout % 8 == 0, "Cout must fill whole sublane tiles"

    # ---- Layout plumbing (plain XLA glue, all tiny) ----
    # x: NCHW -> (Cpad, N*H*W): channels on sublanes, flat spatial on lanes.
    x_p = jnp.pad(x_nchw, ((0, 0), (0, Cpad - Cin), (0, 0), (0, 0)))
    x2d = jnp.transpose(x_p, (1, 0, 2, 3)).reshape(Cpad, N * HW)
    # weight: (Cout, Cin, KH, KW) -> (Cout, KH, KW, Cpad) -> (Cout, K) slab,
    # row ordering (kh, kw, c) to match the in-kernel tap stacking.
    w = jnp.transpose(weight_oihw, (0, 2, 3, 1))
    w = jnp.pad(w, ((0, 0), (0, 0), (0, 0), (0, Cpad - Cin)))
    w2d = w.reshape(Cout, K)
    b2d = bias.reshape(Cout, 1)

    kernel = _make_conv_relu_kernel(KH, KW, W, Cpad, Lb)
    cost = pl.CostEstimate(
        flops=2 * N * OH * OW * KH * KW * Cin * Cout,
        transcendentals=0,
        bytes_accessed=(x2d.size + w2d.size + b2d.size + Cout * N * HW) * 4)

    out2d = pl.pallas_call(
        kernel,
        out_shape=jax.ShapeDtypeStruct((Cout, N * HW), x_nchw.dtype),
        grid_spec=pltpu.PrefetchScalarGridSpec(
            num_scalar_prefetch=0,
            grid=(1,),
            in_specs=[
                pl.BlockSpec((Cpad, Lb), lambda i: (0, i)),
                pl.BlockSpec((Cout, K), lambda i: (0, 0)),
                pl.BlockSpec((Cout, 1), lambda i: (0, 0)),
            ],
            out_specs=pl.BlockSpec((Cout, Lb), lambda i: (0, i)),
            scratch_shapes=[pltpu.VMEM((K, Lb), jnp.float32)],
        ),
        compiler_params=pltpu.CompilerParams(
            dimension_semantics=("arbitrary",)),
        cost_estimate=cost,
    )(x2d, w2d, b2d)

    # (Cout, N*H*W) -> NCHW, keeping only the valid (OH, OW) window.
    out = out2d.reshape(Cout, N, H, W).transpose(1, 0, 2, 3)[:, :, :OH, :OW]
    return out


def conv2d_relu_reference(x_nchw, weight_oihw, bias):
    out = jax.lax.conv_general_dilated(
        x_nchw, weight_oihw,
        window_strides=(1, 1), padding="VALID",
        dimension_numbers=("NCHW", "OIHW", "NCHW"))
    out = out + bias.reshape(1, -1, 1, 1)
    return jnp.maximum(out, 0.0)


if __name__ == "__main__":
    # Module config: dim=2, in_channels=4, out_channels=8, kernel_size=3
    N, Cin, H, W = 2, 4, 16, 16
    Cout, KH, KW = 8, 3, 3

    key = jax.random.PRNGKey(0)
    kx, kwt, kb = jax.random.split(key, 3)

    x = jax.random.normal(kx, (N, Cin, H, W), dtype=jnp.float32)
    # Deterministic parameter init (uniform +/- 1/sqrt(fan_in), like torch default).
    fan_in = Cin * KH * KW
    bound = 1.0 / (fan_in ** 0.5)
    weight = jax.random.uniform(kwt, (Cout, Cin, KH, KW), jnp.float32,
                                minval=-bound, maxval=bound)
    bias = jax.random.uniform(kb, (Cout,), jnp.float32,
                              minval=-bound, maxval=bound)

    out = conv2d_relu_pallas(x, weight, bias)
    out = jax.block_until_ready(out)

    ref = conv2d_relu_reference(x, weight, bias)
    assert out.shape == (N, Cout, H - KH + 1, W - KW + 1)
    assert jnp.allclose(out, ref, atol=1e-5, rtol=1e-5), "mismatch vs reference"

    print("KERNEL_OK")
</pallas_src>

<mosaic_0001>
module attributes {stable_mosaic.version = 11 : i64} {
  func.func @kernel(%arg0: i32, %arg1: memref<8x512xf32, #tpu.memory_space<vmem>>, %arg2: memref<8x72xf32, #tpu.memory_space<vmem>>, %arg3: memref<8x1xf32, #tpu.memory_space<vmem>>, %arg4: memref<8x512xf32, #tpu.memory_space<vmem>>, %arg5: memref<72x512xf32, #tpu.memory_space<vmem>>) attributes {dimension_semantics = [#tpu.dimension_semantics<arbitrary>], iteration_bounds = array<i64: 1>, scalar_prefetch = 0 : i64, scratch_operands = 1 : i64, tpu.core_type = #tpu.core_type<tc>, window_params = [{transform_indices = @transform_0, window_bounds = array<i64: 8, 512>}, {pipeline_mode = #tpu.pipeline_mode<synchronous>, transform_indices = @transform_1, window_bounds = array<i64: 8, 72>}, {pipeline_mode = #tpu.pipeline_mode<synchronous>, transform_indices = @transform_2, window_bounds = array<i64: 8, 1>}, {transform_indices = @transform_3, window_bounds = array<i64: 8, 512>}]} {
    %c0 = arith.constant 0 : index
    %c0_0 = arith.constant 0 : index
    %0 = vector.load %arg1[%c0, %c0_0] : memref<8x512xf32, #tpu.memory_space<vmem>>, vector<8x512xf32>
    %c0_1 = arith.constant 0 : index
    %c0_2 = arith.constant 0 : index
    %1 = vector.load %arg5[%c0_1, %c0_2] : memref<72x512xf32, #tpu.memory_space<vmem>>, vector<8x512xf32>
    tpu.vector_store %arg5[%c0_1, %c0_2], %0 {strides = array<i32>} : memref<72x512xf32, #tpu.memory_space<vmem>>, vector<8x512xf32>,
    %c511_i32 = arith.constant 511 : i32
    %2 = tpu.dynamic_rotate %0 by %c511_i32 dim 1 : vector<8x512xf32>, i32 -> vector<8x512xf32>
    %c8 = arith.constant 8 : index
    %c0_3 = arith.constant 0 : index
    %3 = vector.load %arg5[%c8, %c0_3] : memref<72x512xf32, #tpu.memory_space<vmem>>, vector<8x512xf32>
    tpu.vector_store %arg5[%c8, %c0_3], %2 {strides = array<i32>} : memref<72x512xf32, #tpu.memory_space<vmem>>, vector<8x512xf32>,
    %c510_i32 = arith.constant 510 : i32
    %4 = tpu.dynamic_rotate %0 by %c510_i32 dim 1 : vector<8x512xf32>, i32 -> vector<8x512xf32>
    %c16 = arith.constant 16 : index
    %c0_4 = arith.constant 0 : index
    %5 = vector.load %arg5[%c16, %c0_4] : memref<72x512xf32, #tpu.memory_space<vmem>>, vector<8x512xf32>
    tpu.vector_store %arg5[%c16, %c0_4], %4 {strides = array<i32>} : memref<72x512xf32, #tpu.memory_space<vmem>>, vector<8x512xf32>,
    %c496_i32 = arith.constant 496 : i32
    %6 = tpu.dynamic_rotate %0 by %c496_i32 dim 1 : vector<8x512xf32>, i32 -> vector<8x512xf32>
    %c24 = arith.constant 24 : index
    %c0_5 = arith.constant 0 : index
    %7 = vector.load %arg5[%c24, %c0_5] : memref<72x512xf32, #tpu.memory_space<vmem>>, vector<8x512xf32>
    tpu.vector_store %arg5[%c24, %c0_5], %6 {strides = array<i32>} : memref<72x512xf32, #tpu.memory_space<vmem>>, vector<8x512xf32>,
    %c495_i32 = arith.constant 495 : i32
    %8 = tpu.dynamic_rotate %0 by %c495_i32 dim 1 : vector<8x512xf32>, i32 -> vector<8x512xf32>
    %c32 = arith.constant 32 : index
    %c0_6 = arith.constant 0 : index
    %9 = vector.load %arg5[%c32, %c0_6] : memref<72x512xf32, #tpu.memory_space<vmem>>, vector<8x512xf32>
    tpu.vector_store %arg5[%c32, %c0_6], %8 {strides = array<i32>} : memref<72x512xf32, #tpu.memory_space<vmem>>, vector<8x512xf32>,
    %c494_i32 = arith.constant 494 : i32
    %10 = tpu.dynamic_rotate %0 by %c494_i32 dim 1 : vector<8x512xf32>, i32 -> vector<8x512xf32>
    %c40 = arith.constant 40 : index
    %c0_7 = arith.constant 0 : index
    %11 = vector.load %arg5[%c40, %c0_7] : memref<72x512xf32, #tpu.memory_space<vmem>>, vector<8x512xf32>
    tpu.vector_store %arg5[%c40, %c0_7], %10 {strides = array<i32>} : memref<72x512xf32, #tpu.memory_space<vmem>>, vector<8x512xf32>,
    %c480_i32 = arith.constant 480 : i32
    %12 = tpu.dynamic_rotate %0 by %c480_i32 dim 1 : vector<8x512xf32>, i32 -> vector<8x512xf32>
    %c48 = arith.constant 48 : index
    %c0_8 = arith.constant 0 : index
    %13 = vector.load %arg5[%c48, %c0_8] : memref<72x512xf32, #tpu.memory_space<vmem>>, vector<8x512xf32>
    tpu.vector_store %arg5[%c48, %c0_8], %12 {strides = array<i32>} : memref<72x512xf32, #tpu.memory_space<vmem>>, vector<8x512xf32>,
    %c479_i32 = arith.constant 479 : i32
    %14 = tpu.dynamic_rotate %0 by %c479_i32 dim 1 : vector<8x512xf32>, i32 -> vector<8x512xf32>
    %c56 = arith.constant 56 : index
    %c0_9 = arith.constant 0 : index
    %15 = vector.load %arg5[%c56, %c0_9] : memref<72x512xf32, #tpu.memory_space<vmem>>, vector<8x512xf32>
    tpu.vector_store %arg5[%c56, %c0_9], %14 {strides = array<i32>} : memref<72x512xf32, #tpu.memory_space<vmem>>, vector<8x512xf32>,
    %c478_i32 = arith.constant 478 : i32
    %16 = tpu.dynamic_rotate %0 by %c478_i32 dim 1 : vector<8x512xf32>, i32 -> vector<8x512xf32>
    %c64 = arith.constant 64 : index
    %c0_10 = arith.constant 0 : index
    %17 = vector.load %arg5[%c64, %c0_10] : memref<72x512xf32, #tpu.memory_space<vmem>>, vector<8x512xf32>
    tpu.vector_store %arg5[%c64, %c0_10], %16 {strides = array<i32>} : memref<72x512xf32, #tpu.memory_space<vmem>>, vector<8x512xf32>,
    %c0_11 = arith.constant 0 : index
    %c0_12 = arith.constant 0 : index
    %18 = vector.load %arg2[%c0_11, %c0_12] : memref<8x72xf32, #tpu.memory_space<vmem>>, vector<8x72xf32>
    %c0_13 = arith.constant 0 : index
    %c0_14 = arith.constant 0 : index
    %19 = vector.load %arg5[%c0_13, %c0_14] : memref<72x512xf32, #tpu.memory_space<vmem>>, vector<72x512xf32>
    %cst = arith.constant dense<0.000000e+00> : vector<8x512xf32>
    %20 = tpu.matmul %18, %19, %cst {dimension_numbers = #tpu.dot_dimension_numbers<[1], [0], [0], [1], [0, 0, 1, 1], [], []>} : vector<8x72xf32>, vector<72x512xf32>, vector<8x512xf32> -> vector<8x512xf32>
    %c0_15 = arith.constant 0 : index
    %c0_16 = arith.constant 0 : index
    %21 = vector.load %arg3[%c0_15, %c0_16] : memref<8x1xf32, #tpu.memory_space<vmem>>, vector<8x1xf32>
    %22 = vector.broadcast %21 : vector<8x1xf32> to vector<8x512xf32>
    %23 = arith.addf %20, %22 : vector<8x512xf32>
    %cst_17 = arith.constant 0.000000e+00 : f32
    %24 = vector.broadcast %cst_17 : f32 to vector<8x512xf32>
    %25 = arith.maximumf %23, %24 : vector<8x512xf32>
    %c0_18 = arith.constant 0 : index
    %c0_19 = arith.constant 0 : index
    %26 = vector.load %arg4[%c0_18, %c0_19] : memref<8x512xf32, #tpu.memory_space<vmem>>, vector<8x512xf32>
    tpu.vector_store %arg4[%c0_18, %c0_19], %25 {strides = array<i32>} : memref<8x512xf32, #tpu.memory_space<vmem>>, vector<8x512xf32>,
    return
  }
  func.func @transform_0(%arg0: i32) -> (i32, i32) {
    %c0_i32 = arith.constant 0 : i32
    %c0_i32_0 = arith.constant 0 : i32
    return %c0_i32, %arg0 : i32, i32
  }
  func.func @transform_1(%arg0: i32) -> (i32, i32) {
    %c0_i32 = arith.constant 0 : i32
    %c0_i32_0 = arith.constant 0 : i32
    %c0_i32_1 = arith.constant 0 : i32
    return %c0_i32, %c0_i32_0 : i32, i32
  }
  func.func @transform_2(%arg0: i32) -> (i32, i32) {
    %c0_i32 = arith.constant 0 : i32
    %c0_i32_0 = arith.constant 0 : i32
    %c0_i32_1 = arith.constant 0 : i32
    return %c0_i32, %c0_i32_0 : i32, i32
  }
  func.func @transform_3(%arg0: i32) -> (i32, i32) {
    %c0_i32 = arith.constant 0 : i32
    %c0_i32_0 = arith.constant 0 : i32
    return %c0_i32, %arg0 : i32, i32
  }
}

</mosaic_0001>

<bundles_post_ra>
// kernel: tpu_custom_call.1
= control target key start
LH: loop header
LB: loop body
LE: loop exit
PB: predicated region body
PF: predicated region fallthrough
CT: control target
= control target key end

     0   :  { %8 = vsyncpa [#allocation4], 0  ;;  %s542_s0 = inlined_call_operand.hbm [shape: f32[8,512], index: 0, kind: input, shape index: {}]   ;;  %s543_s1 = inlined_call_operand.vmem [shape: f32[8,72], index: 1, kind: input, shape index: {}]   ;;  %s544_s2 = inlined_call_operand.vmem [shape: f32[8,1], index: 2, kind: input, shape index: {}]   ;;  %s545_s3 = inlined_call_operand.hbm [shape: f32[8,512], index: 3, kind: output, shape index: {}]  }
   0x1   :  { %9 = vsyncpa [#allocation5], 0  ;;  %s444_s12 = smov [#allocation3]  }
   0x2   :  { %s16_s13 = sshll.u32 %s444_s12, 4  ;;  %s17_s13 = int_to_ptr.vmem [resolvable:$true] %s16_s13 }
   0x3   :  { %s408_s14 = scalar_lea.vmem %s17_s13, 512  ;;  %p413_p1 = scmp.lt.s32.totalorder %s17_s13, %s17_s13 }
   0x4   :  { %p409_p0 = scmp.ne.s32.totalorder %s17_s13, %s408_s14  ;;  %p414_p2 = scmp.lt.s32.totalorder %s408_s14, %s408_s14 }
   0x6   :  { %p415_p3 = por %p414_p2, %p413_p1 }
   0x8   :  { %p416_p4 = pnand %p415_p3, %p409_p0 }
   0xa   :  { %419 = shalt.err (!%p416_p4)
}
   0xb   :  { %19 = dma.hbm_to_vmem [thread:$0]  %s542_s0, 512, %s17_s13, [#allocation4]  }
   0xc   :  { %440 = dma.done.wait [#allocation4], 512  }
   0xd   :  { %441 = vsyncadd [#allocation4], 4294966784  ;;  %v479_v0 = vld [vmem:[#allocation3 + $0x10] sm:$0xff]  ;;  %v481_v1 = vld [vmem:[#allocation3] sm:$0xff]  ;;  %s445_s17 = smov 94   ;;  %s446_s0 = smov 95   ;;  %v43_v7 = vlaneseq }
   0xe   :  { %160 = vrot.lane.b32.xlu1 %v479_v0, %s445_s17  ;;  %156 = vrot.lane.b32.xlu0 %v481_v1, %s445_s17  ;;  %v485_v2 = vld [vmem:[#allocation3 + $0x18] sm:$0xff]  ;;  %v487_v3 = vld [vmem:[#allocation3 + $0x8] sm:$0xff]  ;;  %s447_s18 = smov 96   ;;  %s448_s19 = smov 110   ;;  %v452_v4 = vmov 0.0   ;;  %v453_v5 = vmov 0  }
   0xf   :  { %s449_s20 = smov 111   ;;  %s450_s21 = smov 112   ;;  %284 = vmatprep.mubr.f32.mxu0 %v452_v4  ;;  %355 = vmatprep.mubr.f32.mxu1 %v452_v4  ;;  %v210_v6 = vld [vmem:[%s544_s2] sm:$0xff]  ;;  %v522_v8 = vand.u32 127, %v43_v7  ;;  %vm216_vm8 = vcmask 588800  }
  0x10   :  { %s451_s22 = smov 126   ;;  %399 = vset.pattern.permute.xlu0 %v453_v5  ;;  %s454_s23 = smov 127  }
  0x11   :  { %vm164_vm0 = vcmp.lt.s32.totalorder %v522_v8, 94  ;;  %vm147_vm1 = vcmp.lt.s32.totalorder %v522_v8, 95  ;;  %vm130_vm2 = vcmp.lt.s32.totalorder %v522_v8, 96  ;;  %vm113_vm3 = vcmp.lt.s32.totalorder %v522_v8, 110  ;;  %s455_s27 = smov [#allocation6]  }
  0x12   :  { %162 = vrot.lane.b32.xlu1 %v485_v2, %s445_s17  ;;  %158 = vrot.lane.b32.xlu0 %v487_v3, %s445_s17  ;;  %vm96_vm4 = vcmp.lt.s32.totalorder %v522_v8, 111  ;;  %vm79_vm5 = vcmp.lt.s32.totalorder %v522_v8, 112  ;;  %vm62_vm6 = vcmp.lt.s32.totalorder %v522_v8, 126  ;;  %vm45_vm7 = vcmp.lt.s32.totalorder %v522_v8, 127 }
  0x16   :  { %141 = vrot.lane.b32.xlu1 %v487_v3, %s446_s0  ;;  %139 = vrot.lane.b32.xlu0 %v481_v1, %s446_s0 }
  0x1a   :  { %145 = vrot.lane.b32.xlu1 %v485_v2, %s446_s0  ;;  %143 = vrot.lane.b32.xlu0 %v479_v0, %s446_s0 }
  0x1e   :  { %124 = vrot.lane.b32.xlu1 %v487_v3, %s447_s18  ;;  %122 = vrot.lane.b32.xlu0 %v481_v1, %s447_s18 }
  0x22   :  { %128 = vrot.lane.b32.xlu1 %v485_v2, %s447_s18  ;;  %126 = vrot.lane.b32.xlu0 %v479_v0, %s447_s18 }
  0x26   :  { %107 = vrot.lane.b32.xlu1 %v487_v3, %s448_s19  ;;  %105 = vrot.lane.b32.xlu0 %v481_v1, %s448_s19 }
  0x2a   :  { %111 = vrot.lane.b32.xlu1 %v485_v2, %s448_s19  ;;  %109 = vrot.lane.b32.xlu0 %v479_v0, %s448_s19 }
  0x2e   :  { %90 = vrot.lane.b32.xlu1 %v487_v3, %s449_s20  ;;  %88 = vrot.lane.b32.xlu0 %v481_v1, %s449_s20 }
  0x32   :  { %94 = vrot.lane.b32.xlu1 %v485_v2, %s449_s20  ;;  %92 = vrot.lane.b32.xlu0 %v479_v0, %s449_s20 }
  0x36   :  { %73 = vrot.lane.b32.xlu1 %v487_v3, %s450_s21  ;;  %71 = vrot.lane.b32.xlu0 %v481_v1, %s450_s21 }
  0x3a   :  { %77 = vrot.lane.b32.xlu1 %v485_v2, %s450_s21  ;;  %75 = vrot.lane.b32.xlu0 %v479_v0, %s450_s21 }
  0x3e   :  { %56 = vrot.lane.b32.xlu1 %v487_v3, %s451_s22  ;;  %54 = vrot.lane.b32.xlu0 %v481_v1, %s451_s22 }
  0x42   :  { %60 = vrot.lane.b32.xlu1 %v485_v2, %s451_s22  ;;  %58 = vrot.lane.b32.xlu0 %v479_v0, %s451_s22 }
  0x46   :  { %37 = vrot.lane.b32.xlu1 %v487_v3, %s454_s23  ;;  %35 = vrot.lane.b32.xlu0 %v481_v1, %s454_s23 }
  0x4a   :  { %41 = vrot.lane.b32.xlu1 %v485_v2, %s454_s23  ;;  %39 = vrot.lane.b32.xlu0 %v479_v0, %s454_s23 }
  0x4e   :  { %213 = vperm.xlu0 %399, %v210_v6  }
  0x80   :  { %v161_v9 = vpop.permute.xlu1 %160  ;;  %v157_v10 = vpop.permute.xlu0 %156 }
  0x84   :  { %v163_v11 = vpop.permute.xlu1 %162  ;;  %v159_v12 = vpop.permute.xlu0 %158 }
  0x85   :  { %v166_v13 = vsel %vm164_vm0, %v159_v12, %v161_v9  ;;  %v168_v14 = vsel %vm164_vm0, %v163_v11, %v157_v10  ;;  %v167_v15 = vsel %vm164_vm0, %v157_v10, %v159_v12  ;;  %v165_v16 = vsel %vm164_vm0, %v161_v9, %v163_v11 }
  0x86   :  { %234 = vmatprep.subr.mxu0 %v166_v13  ;;  %305 = vmatprep.subr.mxu1 %v168_v14  ;;  %v173_v14 = vld [vmem:[%s543_s1] sm:$0xff]  ;;  %s376_s1 = sshll.u32 %s455_s27, 4  ;;  %s377_s1 = int_to_ptr.vmem [resolvable:$true] %s376_s1 }
  0x87   :  { %235 = vmatpush1.msra.mxu0 %v167_v15  ;;  %306 = vmatpush1.msra.mxu1 %v165_v16  ;;  %s420_s28 = scalar_lea.vmem %s377_s1, 512  ;;  %p425_p6 = scmp.lt.s32.totalorder %s377_s1, %s377_s1 }
  0x88   :  { %v142_v17 = vpop.permute.xlu1 %141  ;;  %v140_v18 = vpop.permute.xlu0 %139  ;;  %p421_p5 = scmp.ne.s32.totalorder %s377_s1, %s420_s28  ;;  %p426_p7 = scmp.lt.s32.totalorder %s420_s28, %s420_s28 }
  0x89   :  { %v150_v24 = vsel %vm147_vm1, %v140_v18, %v142_v17 }
  0x8a   :  { %p427_p8 = por %p426_p7, %p425_p6 }
  0x8c   :  { %v146_v19 = vpop.permute.xlu1 %145  ;;  %v144_v20 = vpop.permute.xlu0 %143  ;;  %p428_p9 = pnand %p427_p8, %p421_p5 }
  0x8d   :  { %v149_v21 = vsel %vm147_vm1, %v142_v17, %v144_v20  ;;  %v151_v22 = vsel %vm147_vm1, %v146_v19, %v140_v18  ;;  %v148_v23 = vsel %vm147_vm1, %v144_v20, %v146_v19 }
  0x8e   :  { %236 = vmatprep.subr.mxu0 %v149_v21  ;;  %307 = vmatprep.subr.mxu1 %v151_v22 }
  0x8f   :  { %237 = vmatpush1.msra.mxu0 %v150_v24  ;;  %308 = vmatpush1.msra.mxu1 %v148_v23 }
  0x90   :  { %v125_v25 = vpop.permute.xlu1 %124  ;;  %v123_v26 = vpop.permute.xlu0 %122 }
  0x91   :  { %v133_v32 = vsel %vm130_vm2, %v123_v26, %v125_v25 }
  0x94   :  { %v129_v27 = vpop.permute.xlu1 %128  ;;  %v127_v28 = vpop.permute.xlu0 %126 }
  0x95   :  { %v132_v29 = vsel %vm130_vm2, %v125_v25, %v127_v28  ;;  %v134_v30 = vsel %vm130_vm2, %v129_v27, %v123_v26  ;;  %v131_v31 = vsel %vm130_vm2, %v127_v28, %v129_v27 }
  0x96   :  { %238 = vmatprep.subr.mxu0 %v132_v29  ;;  %309 = vmatprep.subr.mxu1 %v134_v30 }
  0x97   :  { %239 = vmatpush1.msra.mxu0 %v133_v32  ;;  %310 = vmatpush1.msra.mxu1 %v131_v31 }
  0x98   :  { %v108_v33 = vpop.permute.xlu1 %107  ;;  %v106_v34 = vpop.permute.xlu0 %105 }
  0x99   :  { %v116_v40 = vsel %vm113_vm3, %v106_v34, %v108_v33 }
  0x9c   :  { %v112_v35 = vpop.permute.xlu1 %111  ;;  %v110_v36 = vpop.permute.xlu0 %109 }
  0x9d   :  { %v115_v37 = vsel %vm113_vm3, %v108_v33, %v110_v36  ;;  %v117_v38 = vsel %vm113_vm3, %v112_v35, %v106_v34  ;;  %v114_v39 = vsel %vm113_vm3, %v110_v36, %v112_v35 }
  0x9e   :  { %240 = vmatprep.subr.mxu0 %v115_v37  ;;  %311 = vmatprep.subr.mxu1 %v117_v38 }
  0x9f   :  { %241 = vmatpush1.msra.mxu0 %v116_v40  ;;  %312 = vmatpush1.msra.mxu1 %v114_v39 }
  0xa0   :  { %v91_v41 = vpop.permute.xlu1 %90  ;;  %v89_v42 = vpop.permute.xlu0 %88 }
  0xa1   :  { %v99_v48 = vsel %vm96_vm4, %v89_v42, %v91_v41 }
  0xa4   :  { %v95_v43 = vpop.permute.xlu1 %94  ;;  %v93_v44 = vpop.permute.xlu0 %92 }
  0xa5   :  { %v98_v45 = vsel %vm96_vm4, %v91_v41, %v93_v44  ;;  %v100_v46 = vsel %vm96_vm4, %v95_v43, %v89_v42  ;;  %v97_v47 = vsel %vm96_vm4, %v93_v44, %v95_v43 }
  0xa6   :  { %242 = vmatprep.subr.mxu0 %v98_v45  ;;  %313 = vmatprep.subr.mxu1 %v100_v46 }
  0xa7   :  { %243 = vmatpush1.msra.mxu0 %v99_v48  ;;  %314 = vmatpush1.msra.mxu1 %v97_v47 }
  0xa8   :  { %v74_v49 = vpop.permute.xlu1 %73  ;;  %v72_v50 = vpop.permute.xlu0 %71 }
  0xa9   :  { %v82_v56 = vsel %vm79_vm5, %v72_v50, %v74_v49 }
  0xac   :  { %v78_v51 = vpop.permute.xlu1 %77  ;;  %v76_v52 = vpop.permute.xlu0 %75 }
  0xad   :  { %v81_v53 = vsel %vm79_vm5, %v74_v49, %v76_v52  ;;  %v83_v54 = vsel %vm79_vm5, %v78_v51, %v72_v50  ;;  %v80_v55 = vsel %vm79_vm5, %v76_v52, %v78_v51 }
  0xae   :  { %244 = vmatprep.subr.mxu0 %v81_v53  ;;  %315 = vmatprep.subr.mxu1 %v83_v54 }
  0xaf   :  { %245 = vmatpush1.msra.mxu0 %v82_v56  ;;  %316 = vmatpush1.msra.mxu1 %v80_v55 }
  0xb0   :  { %v57_v57 = vpop.permute.xlu1 %56  ;;  %v55_v58 = vpop.permute.xlu0 %54 }
  0xb1   :  { %v65_v4 = vsel %vm62_vm6, %v55_v58, %v57_v57 }
  0xb4   :  { %v61_v59 = vpop.permute.xlu1 %60  ;;  %v59_v60 = vpop.permute.xlu0 %58 }
  0xb5   :  { %v64_v61 = vsel %vm62_vm6, %v57_v57, %v59_v60  ;;  %v66_v62 = vsel %vm62_vm6, %v61_v59, %v55_v58  ;;  %v63_v63 = vsel %vm62_vm6, %v59_v60, %v61_v59 }
  0xb6   :  { %246 = vmatprep.subr.mxu0 %v64_v61  ;;  %317 = vmatprep.subr.mxu1 %v66_v62 }
  0xb7   :  { %247 = vmatpush1.msra.mxu0 %v65_v4  ;;  %318 = vmatpush1.msra.mxu1 %v63_v63 }
  0xb8   :  { %v38_v5 = vpop.permute.xlu1 %37  ;;  %v36_v6 = vpop.permute.xlu0 %35 }
  0xb9   :  { %v48_v13 = vsel %vm45_vm7, %v36_v6, %v38_v5 }
  0xbc   :  { %v42_v7 = vpop.permute.xlu1 %41  ;;  %v40_v9 = vpop.permute.xlu0 %39 }
  0xbd   :  { %v47_v10 = vsel %vm45_vm7, %v38_v5, %v40_v9  ;;  %v49_v11 = vsel %vm45_vm7, %v42_v7, %v36_v6  ;;  %v46_v12 = vsel %vm45_vm7, %v40_v9, %v42_v7 }
  0xbe   :  { %248 = vmatprep.subr.mxu0 %v47_v10  ;;  %319 = vmatprep.subr.mxu1 %v49_v11 }
  0xbf   :  { %249 = vmatpush1.msra.mxu0 %v48_v13  ;;  %320 = vmatpush1.msra.mxu1 %v46_v12 }
  0xc0   :  { %250 = vmatprep.subr.mxu0 %v487_v3  ;;  %321 = vmatprep.subr.mxu1 %v485_v2 }
  0xc1   :  { %251 = vmatpush1.msra.mxu0 %v481_v1  ;;  %322 = vmatpush1.msra.mxu1 %v479_v0 }
  0xc2   :  { %385 = vmatmul.mubr.msk.f32.vlgmr.msra.gmra.mxu0 %vm216_vm8, %v173_v14  ;;  %386 = vmatmul.mubr.msk.f32.vlgmr.msra.gmra.mxu1 %vm216_vm8, %v173_v14 }
  0xc9   :  { %v214_v8 = vpop.permute.xlu0 %213 }
 0x182   :  { %v286_v15 = vpop.f32.mrf.mxu0  ;;  %v357_v16 = vpop.f32.mrf.mxu1 }
 0x183   :  { %v287_v17 = vadd.f32 %v286_v15, %v214_v8  ;;  %v358_v18 = vadd.f32 %v357_v16, %v214_v8 }
 0x184   :  { %v288_v19 = vpop.f32.mrf.mxu0  ;;  %v359_v20 = vpop.f32.mrf.mxu1 }
 0x185   :  { %v362_v21 = vmax.f32 %v287_v17, 0.0  ;;  %v364_v22 = vmax.f32 %v358_v18, 0.0  ;;  %v289_v3 = vadd.f32 %v288_v19, %v214_v8  ;;  %v360_v23 = vadd.f32 %v359_v20, %v214_v8 }
 0x187   :  { %366 = vst [vmem:[#allocation6] sm:$0xff] %v362_v21  ;;  %368 = vst [vmem:[#allocation6 + $0x10] sm:$0xff] %v364_v22  ;;  %v363_v1 = vmax.f32 %v289_v3, 0.0  ;;  %v365_v2 = vmax.f32 %v360_v23, 0.0 }
 0x189   :  { %367 = vst [vmem:[#allocation6 + $0x8] sm:$0xff] %v363_v1  ;;  %369 = vst [vmem:[#allocation6 + $0x18] sm:$0xff] %v365_v2 }
 0x18a   :  { %431 = shalt.err (!%p428_p9)
}
 0x18b   :  { %379 = dma.vmem_to_hbm [thread:$0]  %s377_s1, 512, %s545_s3, [#allocation5]  }
 0x18c   :  { %442 = dma.done.wait [#allocation5], 512  }
 0x18d   :  { %443 = vsyncadd [#allocation5], 4294966784 }
 0x18e   :  { %383 = vsyncpa [#allocation4], 1 }
 0x18f   :  { %384 = vsyncpa [#allocation5], 1 }

</bundles_post_ra>
